<compile_context>
chip_gen: v5e
topology: v5e:2x2
jax: 0.10.0
libtpu: 0.0.40
codegen_flags: <defaults>
</compile_context>

<pallas_src>
import functools

import jax
import jax.numpy as jnp
from jax import lax
from jax.experimental import pallas as pl
from jax.experimental.pallas import tpu as pltpu


# ---------------------------------------------------------------------------
# Pallas kernel: fused Conv3x3(pad=1) + ReLU + global-avg-pool + Linear for
# one batch tile of TB samples.
# ---------------------------------------------------------------------------
def branch_kernel(x_ref, toe_ref, bc_ref, wl_ref, bl_ref, out_ref, *, h_out, kh):
    # x_ref:   (TB, H+2, (W+2)*Cin)   zero-padded input rows (compute dtype)
    # toe_ref: (kh, (W+2)*Cin, W*Cout) block-Toeplitz conv weights (compute dtype)
    # bc_ref:  (1, W*Cout)            conv bias tiled over output columns (f32)
    # wl_ref:  (W*Cout, NCp)          classifier weight, column-tiled and
    #                                 pre-scaled by 1/(H*W) (f32)
    # bl_ref:  (1, NCp)               classifier bias (f32)
    # out_ref: (TB, NCp)              lane-dense logits for this batch tile
    tb = x_ref.shape[0]
    row_elems = x_ref.shape[2]
    nl = toe_ref.shape[2]

    x = x_ref[...]  # (TB, H+2, (W+2)*Cin)

    # 3x3 conv as kh MXU matmuls: for kernel row di, the (TB*H, (W+2)*Cin) slab
    # of shifted input rows hits a block-Toeplitz (72, 128) weight producing
    # all W output columns x Cout channels lane-dense.  f32 accumulation.
    a = x[:, 0:h_out, :].reshape(tb * h_out, row_elems)
    acc = jnp.dot(a, toe_ref[0], preferred_element_type=jnp.float32)
    for di in range(1, kh):
        a = x[:, di:di + h_out, :].reshape(tb * h_out, row_elems)
        acc = acc + jnp.dot(a, toe_ref[di], preferred_element_type=jnp.float32)

    # Bias + ReLU on the lane-dense (TB*H, W*Cout) slab (f32 VPU).
    act = jnp.maximum(acc + bc_ref[...], 0.0)

    # AdaptiveAvgPool2d(1) + Flatten + Linear, fused:
    #   * sum over output rows (sublane reduction)        -> (TB, W*Cout)
    #   * lane contraction with the column-tiled, 1/(H*W)-scaled classifier
    #     weight performs column-sum, mean scaling and the Linear at once.
    row_sum = jnp.sum(act.reshape(tb, h_out, nl), axis=1)
    logits = jnp.dot(row_sum, wl_ref[...], preferred_element_type=jnp.float32)
    out_ref[...] = logits + bl_ref[...]  # lane-dense (TB, NCp) store


# ---------------------------------------------------------------------------
# Chip-aware VMEM budgeting and batch-tile selection
# ---------------------------------------------------------------------------
def _round_up(n, m):
    return -(-n // m) * m


def _vmem_limit_bytes():
    """Scoped-VMEM limit derived from the actual chip (v7x has less VMEM)."""
    try:
        cap = int(pltpu.get_tpu_info().vmem_capacity_bytes)
    except Exception:  # conservative fallback = v7x-sized VMEM
        cap = 64 << 20
    return int(min(cap * 3 // 4, 100 << 20))


def _per_sample_vmem_bytes(hp, row_elems, h_out, nl, ncp, in_itemsize):
    """Honest per-sample VMEM footprint using (8,128)-padded shapes."""
    in_block = 2 * _round_up(hp, 8) * _round_up(row_elems, 128) * in_itemsize
    conv_acc = 2 * h_out * _round_up(nl, 128) * 4          # f32 acc + relu slab
    row_ops = 2 * h_out * _round_up(row_elems, 128) * in_itemsize  # sliced rows
    out_block = 2 * _round_up(ncp, 128) * 4                # double-buffered out
    return in_block + conv_acc + row_ops + out_block


def _pick_batch_tile(batch, per_sample_bytes, vmem_budget_bytes, max_tb=512):
    tb = int(max(1, min(vmem_budget_bytes // per_sample_bytes, max_tb)))
    if batch >= 16:
        # Keep >= 2 grid steps so both v7x TensorCores get work under
        # dimension_semantics=("parallel",).
        tb = min(tb, _round_up((batch + 1) // 2, 8))
    if tb >= batch:
        return batch
    return max(8, (tb // 8) * 8)


# ---------------------------------------------------------------------------
# Wrapper: weight re-layout (block-Toeplitz) + batch-tiled pallas_call
# ---------------------------------------------------------------------------
def branch_forward(x_nchw, w_conv, b_conv, w_lin, b_lin,
                   *, compute_dtype=jnp.float32, tb=None):
    """Fused Conv2d(Cin,Cout,3,pad=1) + ReLU + AdaptiveAvgPool2d(1) + Flatten + Linear."""
    B, Cin, H, W = x_nchw.shape
    Cout, _, KH, KW = w_conv.shape
    NC = w_lin.shape[1]
    assert (KH, KW) == (3, 3), "kernel specialized to 3x3, stride 1, padding 1"

    Hp, Wp = H + 2, W + 2
    row_elems = Wp * Cin                 # 72
    NL = W * Cout                        # 128 conv-output lanes per image row
    NCp = _round_up(max(NC, 1), 128)     # lane-dense classifier output

    # --- compact input: zero-padded NHWC flattened to image rows -------------
    x_nhwc = jnp.transpose(x_nchw, (0, 2, 3, 1))
    x_pad = jnp.pad(x_nhwc, ((0, 0), (1, 1), (1, 1), (0, 0)))
    x_rows = x_pad.reshape(B, Hp, row_elems).astype(compute_dtype)

    # --- block-Toeplitz conv weights: toe[di][w*Cin+c, j*Cout+o] = W[o,c,di,w-j]
    w_idx = jnp.arange(Wp)
    j_idx = jnp.arange(W)
    dj = w_idx[:, None] - j_idx[None, :]                        # (Wp, W)
    valid = ((dj >= 0) & (dj < KW)).astype(w_conv.dtype)
    djc = jnp.clip(dj, 0, KW - 1)
    wt = jnp.transpose(w_conv, (2, 3, 1, 0))                    # (di, dj, Cin, Cout)
    g = wt[:, djc, :, :] * valid[None, :, :, None, None]        # (KH, Wp, W, Cin, Cout)
    toe = jnp.transpose(g, (0, 1, 3, 2, 4)).reshape(KH, row_elems, NL)
    toe = toe.astype(compute_dtype)

    # Conv bias tiled over the W output-column groups (broadcast add in-kernel).
    bc = jnp.tile(b_conv.astype(jnp.float32), W).reshape(1, NL)

    # Classifier weight tiled over column groups, pre-scaled by 1/(H*W), padded
    # to a lane-dense NCp; classifier bias padded to NCp as well.
    wl_big = jnp.tile(w_lin.astype(jnp.float32), (W, 1)) * (1.0 / float(H * W))
    wl_big = jnp.pad(wl_big, ((0, 0), (0, NCp - NC)))
    bl = jnp.pad(b_lin.reshape(1, NC).astype(jnp.float32), ((0, 0), (0, NCp - NC)))

    # --- batch tiling under an honest, chip-aware VMEM budget ----------------
    in_isz = jnp.dtype(compute_dtype).itemsize
    vmem_limit = _vmem_limit_bytes()
    per_sample = _per_sample_vmem_bytes(Hp, row_elems, H, NL, NCp, in_isz)
    if tb is None:
        budget = max(4 << 20, (vmem_limit - (4 << 20)) // 2)
        tb = _pick_batch_tile(B, per_sample, budget)
    if tb >= B:
        tb = B
    elif tb % 8 != 0:
        tb = max(8, (tb // 8) * 8)
        if tb >= B:
            tb = B
    n_tiles = int(pl.cdiv(B, tb))
    Bp = n_tiles * tb
    if Bp != B:
        x_rows = jnp.pad(x_rows, ((0, Bp - B), (0, 0), (0, 0)))

    kernel = functools.partial(branch_kernel, h_out=H, kh=KH)

    out = pl.pallas_call(
        kernel,
        out_shape=jax.ShapeDtypeStruct((Bp, NCp), jnp.float32),
        grid_spec=pltpu.PrefetchScalarGridSpec(
            num_scalar_prefetch=0,
            grid=(n_tiles,),
            in_specs=[
                pl.BlockSpec((tb, Hp, row_elems), lambda b: (b, 0, 0)),
                pl.BlockSpec((KH, row_elems, NL), lambda b: (0, 0, 0)),
                pl.BlockSpec((1, NL), lambda b: (0, 0)),
                pl.BlockSpec((NL, NCp), lambda b: (0, 0)),
                pl.BlockSpec((1, NCp), lambda b: (0, 0)),
            ],
            out_specs=pl.BlockSpec((tb, NCp), lambda b: (b, 0)),
        ),
        compiler_params=pltpu.CompilerParams(
            dimension_semantics=("parallel",),
            vmem_limit_bytes=int(vmem_limit),
        ),
    )(x_rows, toe, bc, wl_big, bl)

    return out[:B, :NC]


# ---------------------------------------------------------------------------
# Pure-JAX reference of the same Branch forward (real conv, for correctness)
# ---------------------------------------------------------------------------
def branch_reference(x_nchw, w_conv, b_conv, w_lin, b_lin):
    conv = lax.conv_general_dilated(
        x_nchw, w_conv, window_strides=(1, 1), padding=((1, 1), (1, 1)),
        dimension_numbers=("NCHW", "OIHW", "NCHW"))
    act = jnp.maximum(conv + b_conv[None, :, None, None], 0.0)
    pooled = jnp.mean(act, axis=(2, 3))           # AdaptiveAvgPool2d(1) + Flatten
    return pooled @ w_lin + b_lin[None, :]


if __name__ == "__main__":
    B, Cin, H, W = 2, 4, 16, 16
    Cout, K, NC = 8, 3, 10

    key = jax.random.PRNGKey(0)
    kx, kwc, kbc, kwl, kbl, kx2 = jax.random.split(key, 6)

    # PyTorch-layout input and parameters.
    x = jax.random.normal(kx, (B, Cin, H, W), dtype=jnp.float32)
    w_conv = jax.random.normal(kwc, (Cout, Cin, K, K), dtype=jnp.float32) * 0.1
    b_conv = jax.random.normal(kbc, (Cout,), dtype=jnp.float32) * 0.1
    w_lin = jax.random.normal(kwl, (Cout, NC), dtype=jnp.float32) * 0.1
    b_lin = jax.random.normal(kbl, (NC,), dtype=jnp.float32) * 0.1

    ref = branch_reference(x, w_conv, b_conv, w_lin, b_lin)

    # f32 path (single batch tile).
    out = jax.block_until_ready(branch_forward(x, w_conv, b_conv, w_lin, b_lin))
    assert out.shape == (B, NC)
    assert jnp.allclose(out, ref, atol=2e-3, rtol=2e-3), "f32 mismatch"

    # bf16 MXU-input path (valid on v5e / v6e / v7x; accumulation stays f32).
    out_bf16 = jax.block_until_ready(
        branch_forward(x, w_conv, b_conv, w_lin, b_lin, compute_dtype=jnp.bfloat16))
    assert jnp.allclose(out_bf16, ref, atol=5e-2, rtol=5e-2), "bf16 mismatch"

    # Multi-tile path: batch > tile exercises batch padding + slice-back.
    B2 = 20
    x2 = jax.random.normal(kx2, (B2, Cin, H, W), dtype=jnp.float32)
    ref2 = branch_reference(x2, w_conv, b_conv, w_lin, b_lin)
    out2 = jax.block_until_ready(
        branch_forward(x2, w_conv, b_conv, w_lin, b_lin, tb=8))
    assert out2.shape == (B2, NC)
    assert jnp.allclose(out2, ref2, atol=2e-3, rtol=2e-3), "multi-tile mismatch"

    print("KERNEL_OK")
</pallas_src>

<mosaic_0001>
module attributes {stable_mosaic.version = 11 : i64} {
  func.func @branch_kernel(%arg0: i32, %arg1: memref<2x18x72xf32, #tpu.memory_space<vmem>>, %arg2: memref<3x72x128xf32, #tpu.memory_space<vmem>>, %arg3: memref<1x128xf32, #tpu.memory_space<vmem>>, %arg4: memref<128x128xf32, #tpu.memory_space<vmem>>, %arg5: memref<1x128xf32, #tpu.memory_space<vmem>>, %arg6: memref<2x128xf32, #tpu.memory_space<vmem>>) attributes {dimension_semantics = [#tpu.dimension_semantics<parallel>], iteration_bounds = array<i64: 1>, scalar_prefetch = 0 : i64, scratch_operands = 0 : i64, tpu.core_type = #tpu.core_type<tc>, window_params = [{transform_indices = @transform_0, window_bounds = array<i64: 2, 18, 72>}, {pipeline_mode = #tpu.pipeline_mode<synchronous>, transform_indices = @transform_1, window_bounds = array<i64: 3, 72, 128>}, {pipeline_mode = #tpu.pipeline_mode<synchronous>, transform_indices = @transform_2, window_bounds = array<i64: 1, 128>}, {pipeline_mode = #tpu.pipeline_mode<synchronous>, transform_indices = @transform_3, window_bounds = array<i64: 128, 128>}, {pipeline_mode = #tpu.pipeline_mode<synchronous>, transform_indices = @transform_4, window_bounds = array<i64: 1, 128>}, {transform_indices = @transform_5, window_bounds = array<i64: 2, 128>}]} {
    %c0 = arith.constant 0 : index
    %c0_0 = arith.constant 0 : index
    %c0_1 = arith.constant 0 : index
    %0 = vector.load %arg1[%c0, %c0_0, %c0_1] : memref<2x18x72xf32, #tpu.memory_space<vmem>>, vector<2x18x72xf32>
    %1 = vector.extract_strided_slice %0 {offsets = [0, 0, 0], sizes = [2, 16, 72], strides = [1, 1, 1]} : vector<2x18x72xf32> to vector<2x16x72xf32>
    %2 = vector.shape_cast %1 : vector<2x16x72xf32> to vector<32x72xf32>
    %c0_2 = arith.constant 0 : index
    %c0_3 = arith.constant 0 : index
    %c0_4 = arith.constant 0 : index
    %3 = vector.load %arg2[%c0_2, %c0_3, %c0_4] : memref<3x72x128xf32, #tpu.memory_space<vmem>>, vector<1x72x128xf32>
    %4 = vector.shape_cast %3 : vector<1x72x128xf32> to vector<72x128xf32>
    %cst = arith.constant dense<0.000000e+00> : vector<32x128xf32>
    %5 = tpu.matmul %2, %4, %cst {dimension_numbers = #tpu.dot_dimension_numbers<[1], [0], [0], [1], [0, 0, 1, 1], [], []>} : vector<32x72xf32>, vector<72x128xf32>, vector<32x128xf32> -> vector<32x128xf32>
    %6 = vector.extract_strided_slice %0 {offsets = [0, 1, 0], sizes = [2, 16, 72], strides = [1, 1, 1]} : vector<2x18x72xf32> to vector<2x16x72xf32>
    %7 = vector.shape_cast %6 : vector<2x16x72xf32> to vector<32x72xf32>
    %c1 = arith.constant 1 : index
    %c0_5 = arith.constant 0 : index
    %c0_6 = arith.constant 0 : index
    %8 = vector.load %arg2[%c1, %c0_5, %c0_6] : memref<3x72x128xf32, #tpu.memory_space<vmem>>, vector<1x72x128xf32>
    %9 = vector.shape_cast %8 : vector<1x72x128xf32> to vector<72x128xf32>
    %cst_7 = arith.constant dense<0.000000e+00> : vector<32x128xf32>
    %10 = tpu.matmul %7, %9, %cst_7 {dimension_numbers = #tpu.dot_dimension_numbers<[1], [0], [0], [1], [0, 0, 1, 1], [], []>} : vector<32x72xf32>, vector<72x128xf32>, vector<32x128xf32> -> vector<32x128xf32>
    %11 = arith.addf %5, %10 : vector<32x128xf32>
    %12 = vector.extract_strided_slice %0 {offsets = [0, 2, 0], sizes = [2, 16, 72], strides = [1, 1, 1]} : vector<2x18x72xf32> to vector<2x16x72xf32>
    %13 = vector.shape_cast %12 : vector<2x16x72xf32> to vector<32x72xf32>
    %c2 = arith.constant 2 : index
    %c0_8 = arith.constant 0 : index
    %c0_9 = arith.constant 0 : index
    %14 = vector.load %arg2[%c2, %c0_8, %c0_9] : memref<3x72x128xf32, #tpu.memory_space<vmem>>, vector<1x72x128xf32>
    %15 = vector.shape_cast %14 : vector<1x72x128xf32> to vector<72x128xf32>
    %cst_10 = arith.constant dense<0.000000e+00> : vector<32x128xf32>
    %16 = tpu.matmul %13, %15, %cst_10 {dimension_numbers = #tpu.dot_dimension_numbers<[1], [0], [0], [1], [0, 0, 1, 1], [], []>} : vector<32x72xf32>, vector<72x128xf32>, vector<32x128xf32> -> vector<32x128xf32>
    %17 = arith.addf %11, %16 : vector<32x128xf32>
    %c0_11 = arith.constant 0 : index
    %c0_12 = arith.constant 0 : index
    %18 = vector.load %arg3[%c0_11, %c0_12] : memref<1x128xf32, #tpu.memory_space<vmem>>, vector<1x128xf32>
    %19 = vector.broadcast %18 : vector<1x128xf32> to vector<32x128xf32>
    %20 = arith.addf %17, %19 : vector<32x128xf32>
    %cst_13 = arith.constant 0.000000e+00 : f32
    %21 = vector.broadcast %cst_13 : f32 to vector<32x128xf32>
    %22 = arith.maximumf %20, %21 : vector<32x128xf32>
    %23 = vector.shape_cast %22 : vector<32x128xf32> to vector<2x16x128xf32>
    %cst_14 = arith.constant dense<0.000000e+00> : vector<2x128xf32>
    %24 = vector.multi_reduction <add>, %23, %cst_14 [1] : vector<2x16x128xf32> to vector<2x128xf32>
    %c0_15 = arith.constant 0 : index
    %c0_16 = arith.constant 0 : index
    %25 = vector.load %arg4[%c0_15, %c0_16] : memref<128x128xf32, #tpu.memory_space<vmem>>, vector<128x128xf32>
    %cst_17 = arith.constant dense<0.000000e+00> : vector<2x128xf32>
    %26 = tpu.matmul %24, %25, %cst_17 {dimension_numbers = #tpu.dot_dimension_numbers<[1], [0], [0], [1], [0, 0, 1, 1], [], []>} : vector<2x128xf32>, vector<128x128xf32>, vector<2x128xf32> -> vector<2x128xf32>
    %c0_18 = arith.constant 0 : index
    %c0_19 = arith.constant 0 : index
    %27 = vector.load %arg5[%c0_18, %c0_19] : memref<1x128xf32, #tpu.memory_space<vmem>>, vector<1x128xf32>
    %28 = vector.broadcast %27 : vector<1x128xf32> to vector<2x128xf32>
    %29 = arith.addf %26, %28 : vector<2x128xf32>
    %c0_20 = arith.constant 0 : index
    %c0_21 = arith.constant 0 : index
    %30 = vector.load %arg6[%c0_20, %c0_21] : memref<2x128xf32, #tpu.memory_space<vmem>>, vector<2x128xf32>
    tpu.vector_store %arg6[%c0_20, %c0_21], %29 {strides = array<i32>} : memref<2x128xf32, #tpu.memory_space<vmem>>, vector<2x128xf32>,
    return
  }
  func.func @transform_0(%arg0: i32) -> (i32, i32, i32) {
    %c0_i32 = arith.constant 0 : i32
    %c0_i32_0 = arith.constant 0 : i32
    %c0_i32_1 = arith.constant 0 : i32
    return %arg0, %c0_i32, %c0_i32_0 : i32, i32, i32
  }
  func.func @transform_1(%arg0: i32) -> (i32, i32, i32) {
    %c0_i32 = arith.constant 0 : i32
    %c0_i32_0 = arith.constant 0 : i32
    %c0_i32_1 = arith.constant 0 : i32
    %c0_i32_2 = arith.constant 0 : i32
    return %c0_i32, %c0_i32_0, %c0_i32_1 : i32, i32, i32
  }
  func.func @transform_2(%arg0: i32) -> (i32, i32) {
    %c0_i32 = arith.constant 0 : i32
    %c0_i32_0 = arith.constant 0 : i32
    %c0_i32_1 = arith.constant 0 : i32
    return %c0_i32, %c0_i32_0 : i32, i32
  }
  func.func @transform_3(%arg0: i32) -> (i32, i32) {
    %c0_i32 = arith.constant 0 : i32
    %c0_i32_0 = arith.constant 0 : i32
    %c0_i32_1 = arith.constant 0 : i32
    return %c0_i32, %c0_i32_0 : i32, i32
  }
  func.func @transform_4(%arg0: i32) -> (i32, i32) {
    %c0_i32 = arith.constant 0 : i32
    %c0_i32_0 = arith.constant 0 : i32
    %c0_i32_1 = arith.constant 0 : i32
    return %c0_i32, %c0_i32_0 : i32, i32
  }
  func.func @transform_5(%arg0: i32) -> (i32, i32) {
    %c0_i32 = arith.constant 0 : i32
    %c0_i32_0 = arith.constant 0 : i32
    return %arg0, %c0_i32 : i32, i32
  }
}

</mosaic_0001>

<bundles_post_ra>
// kernel: tpu_custom_call.1
= control target key start
LH: loop header
LB: loop body
LE: loop exit
PB: predicated region body
PF: predicated region fallthrough
CT: control target
= control target key end

     0   :  { %10 = vsyncpa [#allocation3], 0  ;;  %s507_s0 = inlined_call_operand.vmem [shape: f32[2,18,72], index: 0, kind: input, shape index: {}]   ;;  %s508_s1 = inlined_call_operand.hbm [shape: f32[3,72,128], index: 1, kind: input, shape index: {}]   ;;  %s509_s2 = inlined_call_operand.vmem [shape: f32[1,128], index: 2, kind: input, shape index: {}]   ;;  %s510_s3 = inlined_call_operand.hbm [shape: f32[128,128], index: 3, kind: input, shape index: {}]   ;;  %s511_s4 = inlined_call_operand.vmem [shape: f32[1,128], index: 4, kind: input, shape index: {}]   ;;  %s512_s5 = inlined_call_operand.hbm [shape: f32[2,128], index: 5, kind: output, shape index: {}]  }
   0x1   :  { %11 = vsyncpa [#allocation6], 0 }
   0x2   :  { %12 = vsyncpa [#allocation4], 0  ;;  %s19_s20 = sshll.u32 %s508_s1, 4  ;;  %s419_s21 = smov [#allocation2]   ;;  %s20_s20 = int_to_ptr.hbm [resolvable:$true] %s19_s20 }
   0x3   :  { %s21_s22 = sshll.u32 %s419_s21, 4  ;;  %s34_s25 = sshll.u32 %s510_s3, 4  ;;  %s22_s22 = int_to_ptr.vmem [resolvable:$true] %s21_s22  ;;  %s35_s25 = int_to_ptr.hbm [resolvable:$true] %s34_s25 }
   0x4   :  { %s420_s26 = smov 128   ;;  %s421_s27 = smov 8  }
   0x5   :  { %27 = dma.hbm_to_vmem [thread:$0]  %s20_s20, 3456, %s22_s22, [#allocation3], %s420_s26, %s420_s26, %s421_s27  }
   0x6   :  { %s422_s28 = smov [#allocation5]  }
   0x7   :  { %s36_s29 = sshll.u32 %s422_s28, 4  ;;  %s37_s29 = int_to_ptr.vmem [resolvable:$true] %s36_s29 }
   0x8   :  { %42 = dma.hbm_to_vmem [thread:$0]  %s35_s25, 2048, %s37_s29, [#allocation6], %s420_s26, %s420_s26, %s421_s27  }
   0x9   :  { %413 = dma.done.wait [#allocation3], 3456  }
   0xa   :  { %414 = vsyncadd [#allocation3], 4294963840 }
   0xb   :  { %415 = dma.done.wait [#allocation6], 2048  }
   0xc   :  { %416 = vsyncadd [#allocation6], 4294965248  ;;  %v190_v0 = vld [vmem:[#allocation2 + $0xd0] sm:$0xff]  ;;  %v189_v1 = vld [vmem:[#allocation2 + $0xc8] sm:$0xff]  ;;  %vm170_vm0 = vcmask 1045504   ;;  %vm74_vm1 = vcmask 1046528  }
   0xd   :  { %v94_v2 = vld [vmem:[#allocation2 + $0x88] sm:$0xff]  ;;  %206 = vmatpush.msra.mxu2 %v190_v0  ;;  %v67_v3 = vld [vmem:[#allocation2 + $0x40] sm:$0xff]  ;;  %v66_v6 = vld [vmem:[#allocation2 + $0x38] sm:$0xff]  ;;  %vm95_vm2 = vcmask 588800   ;;  %vm280_vm3 = vcmask 1041409   ;;  %s423_s17 = smov [#allocation7]  }
   0xe   :  { %111 = vmatpush.msra.mxu0 %v94_v2  ;;  %v93_v4 = vld [vmem:[#allocation2 + $0x80] sm:$0xff]  ;;  %148 = vmatpush.msra.mxu1 %v67_v3  ;;  %v92_v7 = vld [vmem:[#allocation2 + $0x78] sm:$0xff]  ;;  %v65_v8 = vld [vmem:[#allocation2 + $0x30] sm:$0xff]  ;;  %s309_s18 = sshll.u32 %s423_s17, 4  ;;  %s311_s21 = sshll.u32 %s512_s5, 4  ;;  %s310_s18 = int_to_ptr.vmem [resolvable:$true] %s309_s18  ;;  %s312_s21 = int_to_ptr.hbm [resolvable:$true] %s311_s21 }
   0xf   :  { %v188_v5 = vld [vmem:[#allocation2 + $0xc0] sm:$0xff]  ;;  %207 = vmatpush.msra.mxu2 %v189_v1  ;;  %v187_v9 = vld [vmem:[#allocation2 + $0xb8] sm:$0xff]  ;;  %v91_v10 = vld [vmem:[#allocation2 + $0x70] sm:$0xff] }
  0x10   :  { %112 = vmatpush.msra.mxu0 %v93_v4  ;;  %149 = vmatpush.msra.mxu1 %v66_v6  ;;  %v64_v11 = vld [vmem:[#allocation2 + $0x28] sm:$0xff]  ;;  %v186_v12 = vld [vmem:[#allocation2 + $0xb0] sm:$0xff]  ;;  %v63_v15 = vld [vmem:[#allocation2 + $0x20] sm:$0xff] }
  0x11   :  { %208 = vmatpush.msra.mxu2 %v188_v5  ;;  %v90_v13 = vld [vmem:[#allocation2 + $0x68] sm:$0xff]  ;;  %v89_v16 = vld [vmem:[#allocation2 + $0x60] sm:$0xff]  ;;  %v62_v19 = vld [vmem:[#allocation2 + $0x18] sm:$0xff] }
  0x12   :  { %113 = vmatpush.msra.mxu0 %v92_v7  ;;  %150 = vmatpush.msra.mxu1 %v65_v8  ;;  %v185_v14 = vld [vmem:[#allocation2 + $0xa8] sm:$0xff]  ;;  %v53_v17 = vld [vmem:[%s507_s0] sm:$0xff]  ;;  %v88_v21 = vld [vmem:[#allocation2 + $0x58] sm:$0xff] }
  0x13   :  { %209 = vmatpush.msra.mxu2 %v187_v9  ;;  %v54_v18 = vld [vmem:[%s507_s0 + $0x8] sm:$0xff]  ;;  %v184_v20 = vld [vmem:[#allocation2 + $0xa0] sm:$0xff]  ;;  %v61_v22 = vld [vmem:[#allocation2 + $0x10] sm:$0xff]  ;;  %v171_v23 = vrot.slane %v53_v17, 2  ;;  %v75_v27 = vrot.slane %v53_v17, 1 }
  0x14   :  { %114 = vmatpush.msra.mxu0 %v91_v10  ;;  %151 = vmatpush.msra.mxu1 %v64_v11  ;;  %v172_v24 = vrot.slane %v54_v18, 2  ;;  %v183_v25 = vld [vmem:[#allocation2 + $0x98] sm:$0xff]  ;;  %v87_v26 = vld [vmem:[#allocation2 + $0x50] sm:$0xff]  ;;  %v76_v28 = vrot.slane %v54_v18, 1  ;;  %v60_v29 = vld [vmem:[#allocation2 + $0x8] sm:$0xff] }
  0x15   :  { %210 = vmatpush.msra.mxu2 %v186_v12  ;;  %v182_v30 = vld [vmem:[#allocation2 + $0x90] sm:$0xff]  ;;  %v86_v31 = vld [vmem:[#allocation2 + $0x48] sm:$0xff]  ;;  %v59_v33 = vld [vmem:[#allocation2] sm:$0xff] }
  0x16   :  { %115 = vmatpush.msra.mxu0 %v90_v13  ;;  %152 = vmatpush.msra.mxu1 %v63_v15  ;;  %v173_v32 = vsel %vm170_vm0, %v171_v23, %v172_v24  ;;  %v77_v34 = vsel %vm74_vm1, %v75_v27, %v76_v28  ;;  %v55_v35 = vld [vmem:[%s507_s0 + $0x10] sm:$0x3]  ;;  %v56_v40 = vld [vmem:[%s507_s0 + $0x18] sm:$0xff]  ;;  %v57_v41 = vld [vmem:[%s507_s0 + $0x20] sm:$0xff] }
  0x17   :  { %211 = vmatpush.msra.mxu2 %v185_v14  ;;  %v174_v36 = vrot.slane %v55_v35, 2  ;;  %v78_v37 = vrot.slane %v55_v35, 1  ;;  %v176_v42 = vrot.slane %v56_v40, 2  ;;  %v177_v43 = vrot.slane %v57_v41, 2  ;;  %v58_v48 = vld [vmem:[%s507_s0 + $0x28] sm:$0x3] }
  0x18   :  { %116 = vmatpush.msra.mxu0 %v89_v16  ;;  %153 = vmatpush.msra.mxu1 %v62_v19  ;;  %v80_v44 = vrot.slane %v56_v40, 1  ;;  %v81_v45 = vrot.slane %v57_v41, 1  ;;  %v179_v49 = vrot.slane %v58_v48, 2  ;;  %v83_v50 = vrot.slane %v58_v48, 1  ;;  %v273_v53 = vld [vmem:[#allocation5 + $0x78] sm:$0xff]  ;;  %v272_v54 = vld [vmem:[#allocation5 + $0x70] sm:$0xff] }
  0x19   :  { %212 = vmatpush.msra.mxu2 %v184_v20  ;;  %v175_v38 = vsel %vm170_vm0, %v172_v24, %v174_v36  ;;  %v79_v39 = vsel %vm74_vm1, %v76_v28, %v78_v37  ;;  %v178_v46 = vsel %vm170_vm0, %v176_v42, %v177_v43  ;;  %283 = vmatpush.msra.mxu3 %v273_v53  ;;  %v271_v55 = vld [vmem:[#allocation5 + $0x68] sm:$0xff]  ;;  %v270_v56 = vld [vmem:[#allocation5 + $0x60] sm:$0xff]  ;;  %v269_v57 = vld [vmem:[#allocation5 + $0x58] sm:$0xff] }
  0x1a   :  { %117 = vmatpush.msra.mxu0 %v88_v21  ;;  %154 = vmatpush.msra.mxu1 %v61_v22  ;;  %v82_v47 = vsel %vm74_vm1, %v80_v44, %v81_v45  ;;  %v180_v51 = vsel %vm170_vm0, %v177_v43, %v179_v49  ;;  %v84_v52 = vsel %vm74_vm1, %v81_v45, %v83_v50  ;;  %v268_v58 = vld [vmem:[#allocation5 + $0x50] sm:$0xff]  ;;  %v267_v59 = vld [vmem:[#allocation5 + $0x48] sm:$0xff]  ;;  %v266_v62 = vld [vmem:[#allocation5 + $0x40] sm:$0xff] }
  0x1b   :  { %213 = vmatpush.msra.mxu2 %v183_v25  ;;  %284 = vmatpush.msra.mxu3 %v272_v54  ;;  %v265_v63 = vld [vmem:[#allocation5 + $0x38] sm:$0xff]  ;;  %v264_v1 = vld [vmem:[#allocation5 + $0x30] sm:$0xff]  ;;  %v263_v2 = vld [vmem:[#allocation5 + $0x28] sm:$0xff] }
  0x1c   :  { %118 = vmatpush.msra.mxu0 %v87_v26  ;;  %155 = vmatpush.msra.mxu1 %v60_v29  ;;  %v262_v5 = vld [vmem:[#allocation5 + $0x20] sm:$0xff]  ;;  %v261_v6 = vld [vmem:[#allocation5 + $0x18] sm:$0xff]  ;;  %v260_v9 = vld [vmem:[#allocation5 + $0x10] sm:$0xff] }
  0x1d   :  { %214 = vmatpush.msra.mxu2 %v182_v30  ;;  %285 = vmatpush.msra.mxu3 %v271_v55  ;;  %v259_v11 = vld [vmem:[#allocation5 + $0x8] sm:$0xff]  ;;  %v258_v15 = vld [vmem:[#allocation5] sm:$0xff] }
  0x1e   :  { %119 = vmatpush.msra.mxu0 %v86_v31  ;;  %330 = vmatmul.msk.f32.vlgmr.msra.gmra.mxu2 %vm95_vm2, %v173_v32  ;;  %v339_v13 = vld [vmem:[%s509_s2] ss:$0 sm:$0xff] }
  0x1f   :  { %156 = vmatpush.msra.mxu1 %v59_v33  ;;  %322 = vmatmul.msk.f32.vlgmr.msra.gmra.mxu0 %vm95_vm2, %v77_v34  ;;  %v340_v49 = vld [vmem:[%s511_s4] ss:$0 sm:$0xff] }
  0x20   :  { %326 = vmatmul.msk.f32.vlgmr.msra.gmra.mxu1 %vm95_vm2, %v53_v17  ;;  %286 = vmatpush.msra.mxu3 %v270_v56 }
  0x22   :  { %287 = vmatpush.msra.mxu3 %v269_v57 }
  0x24   :  { %288 = vmatpush.msra.mxu3 %v268_v58 }
  0x26   :  { %331 = vmatmul.msk.f32.gmra.mxu2 %vm95_vm2, %v175_v38  ;;  %289 = vmatpush.msra.mxu3 %v267_v59 }
  0x27   :  { %323 = vmatmul.msk.f32.gmra.mxu0 %vm95_vm2, %v79_v39 }
  0x28   :  { %327 = vmatmul.msk.f32.gmra.mxu1 %vm95_vm2, %v54_v18  ;;  %290 = vmatpush.msra.mxu3 %v266_v62 }
  0x2a   :  { %291 = vmatpush.msra.mxu3 %v265_v63 }
  0x2c   :  { %292 = vmatpush.msra.mxu3 %v264_v1 }
  0x2e   :  { %332 = vmatmul.msk.f32.gmra.mxu2 %vm95_vm2, %v178_v46  ;;  %293 = vmatpush.msra.mxu3 %v263_v2 }
  0x2f   :  { %324 = vmatmul.msk.f32.gmra.mxu0 %vm95_vm2, %v82_v47 }
  0x30   :  { %328 = vmatmul.msk.f32.gmra.mxu1 %vm95_vm2, %v56_v40  ;;  %294 = vmatpush.msra.mxu3 %v262_v5 }
  0x32   :  { %295 = vmatpush.msra.mxu3 %v261_v6 }
  0x34   :  { %296 = vmatpush.msra.mxu3 %v260_v9 }
  0x36   :  { %333 = vmatmul.msk.f32.gmra.mxu2 %vm95_vm2, %v180_v51  ;;  %297 = vmatpush.msra.mxu3 %v259_v11 }
  0x37   :  { %325 = vmatmul.msk.f32.gmra.mxu0 %vm95_vm2, %v84_v52 }
  0x38   :  { %329 = vmatmul.msk.f32.gmra.mxu1 %vm95_vm2, %v57_v41  ;;  %298 = vmatpush.msra.mxu3 %v258_v15 }
  0x9c   :  { %v121_v60 = vpop.f32.mrf.mxu0 }
  0x9d   :  { %v158_v61 = vpop.f32.mrf.mxu1 }
  0x9e   :  { %v159_v7 = vadd.f32 %v158_v61, %v121_v60 }
  0xa1   :  { %v216_v0 = vpop.f32.mrf.mxu2 }
  0xa2   :  { %v228_v12 = vadd.f32 %v216_v0, %v159_v7 }
  0xa4   :  { %v124_v3 = vpop.f32.mrf.mxu0  ;;  %v236_v19 = vadd.f32 %v339_v13, %v228_v12 }
  0xa5   :  { %v161_v4 = vpop.f32.mrf.mxu1 }
  0xa6   :  { %v162_v8 = vadd.f32 %v161_v4, %v124_v3  ;;  %v240_v22 = vmax.f32 %v236_v19, 0.0 }
  0xa9   :  { %v219_v10 = vpop.f32.mrf.mxu2 }
  0xaa   :  { %v229_v14 = vadd.f32 %v219_v10, %v162_v8 }
  0xac   :  { %v237_v16 = vadd.f32 %v339_v13, %v229_v14  ;;  %v127_v17 = vpop.f32.mrf.mxu0 }
  0xad   :  { %v164_v18 = vpop.f32.mrf.mxu1 }
  0xae   :  { %v241_v20 = vmax.f32 %v237_v16, 0.0  ;;  %v165_v23 = vadd.f32 %v164_v18, %v127_v17 }
  0xb0   :  { %v244_v24 = vadd.f32 %v241_v20, %v240_v22 }
  0xb1   :  { %v222_v21 = vpop.f32.mrf.mxu2 }
  0xb2   :  { %v230_v27 = vadd.f32 %v222_v21, %v165_v23  ;;  %v245_v29 = vrot.slane %v244_v24, 4 }
  0xb4   :  { %v130_v25 = vpop.f32.mrf.mxu0  ;;  %v238_v31 = vadd.f32 %v339_v13, %v230_v27  ;;  %v246_v33 = vadd.f32 %v245_v29, %v244_v24 }
  0xb5   :  { %v167_v26 = vpop.f32.mrf.mxu1 }
  0xb6   :  { %v168_v28 = vadd.f32 %v167_v26, %v130_v25  ;;  %v242_v35 = vmax.f32 %v238_v31, 0.0  ;;  %v247_v38 = vrot.slane %v246_v33, 2 }
  0xb8   :  { %v248_v41 = vadd.f32 %v247_v38, %v246_v33 }
  0xb9   :  { %v225_v30 = vpop.f32.mrf.mxu2 }
  0xba   :  { %v231_v32 = vadd.f32 %v225_v30, %v168_v28  ;;  %v249_v43 = vrot.slane %v248_v41, 1 }
  0xbc   :  { %v239_v34 = vadd.f32 %v339_v13, %v231_v32  ;;  %v250_v46 = vadd.f32 %v249_v43, %v248_v41 }
  0xbe   :  { %v243_v36 = vmax.f32 %v239_v34, 0.0 }
  0xc0   :  { %v251_v37 = vadd.f32 %v243_v36, %v242_v35 }
  0xc2   :  { %v252_v39 = vrot.slane %v251_v37, 4 }
  0xc4   :  { %v253_v40 = vadd.f32 %v252_v39, %v251_v37 }
  0xc6   :  { %v254_v42 = vrot.slane %v253_v40, 2 }
  0xc8   :  { %v255_v44 = vadd.f32 %v254_v42, %v253_v40 }
  0xca   :  { %v256_v45 = vrot.slane %v255_v44, 1 }
  0xcc   :  { %v257_v47 = vadd.f32 %v256_v45, %v255_v44 }
  0xce   :  { %v281_v48 = vsel %vm280_vm3, %v257_v47, %v250_v46 }
  0xcf   :  { %299 = vmatmul.f32.vlgmr.msra.gmra.mxu3 %v281_v48 }
 0x152   :  { %v300_v50 = vpop.f32.mrf.mxu3 }
 0x153   :  { %v301_v51 = vadd.f32 %v340_v49, %v300_v50 }
 0x155   :  { %303 = vst [vmem:[#allocation7] sm:$0x3] %v301_v51 }
 0x156   :  { %314 = dma.vmem_to_hbm [thread:$0]  %s310_s18, 32, %s312_s21, [#allocation4]  }
 0x157   :  { %417 = dma.done.wait [#allocation4], 32  }
 0x158   :  { %418 = vsyncadd [#allocation4], 4294967264 }
 0x159   :  { %319 = vsyncpa [#allocation3], 1 }
 0x15a   :  { %320 = vsyncpa [#allocation6], 1 }
 0x15b   :  { %321 = vsyncpa [#allocation4], 1 }

</bundles_post_ra>
